<compile_context>
chip_gen: v7x
topology: tpu7x:2x2x1
jax: 0.10.0
libtpu: 0.0.40
codegen_flags: <defaults>
</compile_context>

<pallas_src>
import numpy as np
import jax
import jax.numpy as jnp
from jax import lax
from jax.experimental import pallas as pl
from jax.experimental.pallas import tpu as pltpu

_LANE = 128
_MAX_BLOCK_ROWS = 2048   # 2048*128*4B = 1 MiB per (rows,128) plane per buffer
_MIN_BLOCK_ROWS = 8


def _evolve_planes(t, xi0, xi1, xi2, *, spiral, flip, mu, om, mu_s, T):
    """Shared elementwise algebra (Pallas kernel body + jnp fast path).

    Args are same-shape f32 arrays; branch flags / rate constants are Python
    scalars folded at trace time.  Rotating (xi0, xi1) by -th0 gives
    h0 = r = sqrt(xi0^2 + xi1^2) and h1 = 0 exactly, so the atan2/cos/sin
    chain for th0 is replaced by (cos_th0, sin_th0) = (xi0, xi1)*rsqrt(r2)
    and cos/sin(th_t) are built by angle addition.
    """
    two_pi_over_T = 2.0 * np.pi / float(T)

    r2 = xi0 * xi0 + xi1 * xi1
    nz = r2 > 0.0
    rinv = lax.rsqrt(jnp.where(nz, r2, 1.0))
    r = jnp.sqrt(r2)                               # overflow-safe (inf stays inf)
    # atan2(0, 0) == 0  ->  cos_th0 = 1, sin_th0 = 0 when r2 == 0.
    cos_th0 = jnp.where(nz, xi0 * rinv, 1.0)
    sin_th0 = jnp.where(nz, xi1 * rinv, 0.0)

    d0 = r - 1.0                                   # de_xi_0[:, 0]
    d2 = xi2                                       # de_xi_0[:, 2]
    # de_xi_0[:, 1] == 0 exactly after the -th0 rotation.

    if spiral:
        c = jnp.cos(om * t)
        s = jnp.sin(om * t)
        dt0 = c * d0 + s * d2
        dt2 = -s * d0 + c * d2
        if mu != 0.0:
            e = jnp.exp(mu * t)
            dt0 = e * dt0
            dt2 = e * dt2
    elif flip:
        # Only the final two torch assignments survive (earlier in-place
        # writes are overwritten); they need th0/2 explicitly.
        th0 = jnp.arctan2(xi1, xi0)
        ang = 0.5 * th0 + om * t
        c = jnp.cos(ang)
        s = jnp.sin(ang)
        dt0 = c * d0 + s * d2
        dt2 = -s * d0 + c * d2
    else:
        dt0 = d0 if mu_s == 0.0 else jnp.exp(mu_s * t) * d0
        dt2 = d2 if mu == 0.0 else jnp.exp(mu * t) * d2

    ht0 = dt0 + 1.0                                # xi_t_hat[:, 0]
    ht2 = dt2                                      # xi_t_hat[:, 2]; ht1 == 0

    # th_t = th0 + t*2*pi/T -> angle addition instead of atan2 + cos/sin(th_t)
    alpha = t * two_pi_over_T
    ca = jnp.cos(alpha)
    sa = jnp.sin(alpha)
    cos_tht = cos_th0 * ca - sin_th0 * sa
    sin_tht = sin_th0 * ca + cos_th0 * sa

    # ht1 == 0, so the cross terms vanish.
    return cos_tht * ht0, sin_tht * ht0, ht2


def _make_evolver_kernel(spiral, flip, mu, om, mu_s, T):
    def kernel(x_ref, o_ref):
        # x_ref: (4, block_rows, 128) planar [t, xi0, xi1, xi2]
        o0, o1, o2 = _evolve_planes(
            x_ref[0], x_ref[1], x_ref[2], x_ref[3],
            spiral=spiral, flip=flip, mu=mu, om=om, mu_s=mu_s, T=T)
        o_ref[0] = o0
        o_ref[1] = o1
        o_ref[2] = o2
    return kernel


def _static_branch(mu, om, T, om_provided):
    # mirror torch __init__ branch selection (static, trace-time decision)
    if om_provided:
        flip = bool(np.real(np.exp(1j * float(om) * float(T)) + 1.0) < 1e-7)
    else:
        flip = False
    spiral = (float(om) != 0.0) and (not flip)
    return spiral, flip


def evolver_forward(x, mu, om, mu_s=0.0, T=2.0 * np.pi, om_provided=False,
                    min_pallas_batch=8192):
    """Pallas TPU implementation of Evolver.forward.

    x: [B, C] float32, C >= 4 (x[:, 0] = t, x[:, 1:] = xi).  Returns [B, C-1].
    mu/om/mu_s/T must be Python floats (branch choice is static, like torch
    __init__).  Batches below `min_pallas_batch` run the same algebra as
    plain fused jnp (the pallas fixed cost + layout passes dominate there).
    """
    B, C = x.shape
    D = C - 1
    assert C >= 4, "Evolver expects x[:, 0] = t and >= 3 xi components"

    spiral, flip = _static_branch(mu, om, T, om_provided)
    mu, om, mu_s, T = float(mu), float(om), float(mu_s), float(T)

    xf = jnp.asarray(x, jnp.float32)

    if B < min_pallas_batch:
        # Small-batch fast path: fused elementwise jnp, no relayout/pallas cost.
        o0, o1, o2 = _evolve_planes(
            xf[:, 0], xf[:, 1], xf[:, 2], xf[:, 3],
            spiral=spiral, flip=flip, mu=mu, om=om, mu_s=mu_s, T=T)
        out012 = jnp.stack([o0, o1, o2], axis=1)
    else:
        # --- adaptive tiling over the batch axis ------------------------------
        rows = -(-B // _LANE)
        grid = -(-rows // _MAX_BLOCK_ROWS)
        if grid == 1 and rows >= 2 * _MIN_BLOCK_ROWS:
            grid = 2            # let v7x shard the parallel axis over both TCs
        block_rows = ((-(-rows // grid) + _MIN_BLOCK_ROWS - 1)
                      // _MIN_BLOCK_ROWS) * _MIN_BLOCK_ROWS
        grid = -(-rows // block_rows)
        rows_pad = grid * block_rows
        B_pad = rows_pad * _LANE

        # Single planar relayout pass: [B, :4] -> (4, rows_pad, 128).
        xc = jnp.pad(xf[:, :4], ((0, B_pad - B), (0, 0)))   # zero pad: r2==0 guarded
        x_planar = xc.T.reshape(4, rows_pad, _LANE)

        kernel = _make_evolver_kernel(spiral, flip, mu, om, mu_s, T)

        o_planar = pl.pallas_call(
            kernel,
            out_shape=jax.ShapeDtypeStruct((3, rows_pad, _LANE), jnp.float32),
            grid=(grid,),
            in_specs=[pl.BlockSpec((4, block_rows, _LANE), lambda i: (0, i, 0))],
            out_specs=pl.BlockSpec((3, block_rows, _LANE), lambda i: (0, i, 0)),
            compiler_params=pltpu.CompilerParams(
                dimension_semantics=("parallel",),
                vmem_limit_bytes=32 * 1024 * 1024),
        )(x_planar)

        # Single relayout pass back: (3, rows_pad, 128) -> [B, 3].
        out012 = o_planar.reshape(3, B_pad).T[:B]

    if D > 3:
        # components >= 3 pass through unchanged.
        # TODO(synk): write passthrough columns via input_output_aliases on a
        # preallocated output to avoid this extra copy.
        out = jnp.concatenate([out012, xf[:, 4:]], axis=1)
    else:
        out = out012
    return out


def evolver_reference(x, mu, om, mu_s=0.0, T=2.0 * np.pi, om_provided=False):
    """Pure-JAX reference mirroring the torch forward exactly (verification)."""
    spiral, flip = _static_branch(mu, om, T, om_provided)
    mu, om, mu_s, T = float(mu), float(om), float(mu_s), float(T)

    x = jnp.asarray(x, jnp.float32)
    t = x[:, 0]
    xi = x[:, 1:]
    th0 = jnp.arctan2(xi[:, 1], xi[:, 0])
    h0 = jnp.cos(-th0) * xi[:, 0] - jnp.sin(-th0) * xi[:, 1]
    h1 = jnp.sin(-th0) * xi[:, 0] + jnp.cos(-th0) * xi[:, 1]
    d0, d1, d2 = h0 - 1.0, h1, xi[:, 2]
    if spiral:
        e = jnp.exp(mu * t)
        dt0 = e * (jnp.cos(om * t) * d0 + jnp.sin(om * t) * d2)
        dt2 = e * (-jnp.sin(om * t) * d0 + jnp.cos(om * t) * d2)
    elif flip:
        ang = th0 / 2.0 + om * t
        dt0 = jnp.cos(ang) * d0 + jnp.sin(ang) * d2
        dt2 = -jnp.sin(ang) * d0 + jnp.cos(ang) * d2
    else:
        dt0 = jnp.exp(mu_s * t) * d0
        dt2 = jnp.exp(mu * t) * d2
    ht0, ht1, ht2 = dt0 + 1.0, d1, dt2
    th_t = th0 + t / T * 2.0 * np.pi
    o0 = jnp.cos(th_t) * ht0 - jnp.sin(th_t) * ht1
    o1 = jnp.sin(th_t) * ht0 + jnp.cos(th_t) * ht1
    out = xi
    out = out.at[:, 0].set(o0).at[:, 1].set(o1).at[:, 2].set(ht2)
    return out


if __name__ == "__main__":
    key = jax.random.PRNGKey(0)
    k_mu, k_om, k_x1, k_x2, k_x3 = jax.random.split(key, 5)

    # deterministic parameter init, mirroring torch.rand(()) defaults
    mu = float(jax.random.uniform(k_mu, ()))
    om = float(jax.random.uniform(k_om, ()))
    mu_s = 0.0
    T = 2.0 * np.pi

    # --- case 1: tiny spiral case; force the Pallas path ----------------------
    B, C = 8, 4
    x = jax.random.normal(k_x1, (B, C), dtype=jnp.float32)
    out = jax.block_until_ready(
        evolver_forward(x, mu, om, mu_s, T, min_pallas_batch=0))
    ref = evolver_reference(x, mu, om, mu_s, T)
    assert out.shape == (B, C - 1)
    np.testing.assert_allclose(np.asarray(out), np.asarray(ref),
                               rtol=1e-5, atol=2e-5)

    # --- case 2: non-multiple-of-128 batch + passthrough columns --------------
    B2, C2 = 300, 6
    x2 = jax.random.normal(k_x2, (B2, C2), dtype=jnp.float32)
    out2 = jax.block_until_ready(
        evolver_forward(x2, mu, om, mu_s, T, min_pallas_batch=0))
    ref2 = evolver_reference(x2, mu, om, mu_s, T)
    assert out2.shape == (B2, C2 - 1)
    np.testing.assert_allclose(np.asarray(out2), np.asarray(ref2),
                               rtol=1e-5, atol=2e-5)

    # --- case 3: om == 0 ("neither" branch; exp folds away with mu_s == 0) ----
    B3, C3 = 257, 4
    x3 = jax.random.normal(k_x3, (B3, C3), dtype=jnp.float32)
    out3 = jax.block_until_ready(
        evolver_forward(x3, mu, 0.0, mu_s, T, min_pallas_batch=0))
    ref3 = evolver_reference(x3, mu, 0.0, mu_s, T)
    np.testing.assert_allclose(np.asarray(out3), np.asarray(ref3),
                               rtol=1e-5, atol=2e-5)

    # --- case 4: default small-batch fast path (no pallas) --------------------
    out4 = jax.block_until_ready(evolver_forward(x, mu, om, mu_s, T))
    np.testing.assert_allclose(np.asarray(out4), np.asarray(ref),
                               rtol=1e-5, atol=2e-5)

    print("KERNEL_OK")
</pallas_src>

<mosaic_0001>
module attributes {stable_mosaic.version = 11 : i64} {
  func.func @kernel(%arg0: i32, %arg1: memref<4x8x128xf32, #tpu.memory_space<vmem>>, %arg2: memref<3x8x128xf32, #tpu.memory_space<vmem>>) attributes {dimension_semantics = [#tpu.dimension_semantics<parallel>], iteration_bounds = array<i64: 1>, scalar_prefetch = 0 : i64, scratch_operands = 0 : i64, tpu.core_type = #tpu.core_type<tc>, window_params = [{transform_indices = @transform_0, window_bounds = array<i64: 4, 8, 128>}, {transform_indices = @transform_1, window_bounds = array<i64: 3, 8, 128>}]} {
    %c0 = arith.constant 0 : index
    %c0_0 = arith.constant 0 : index
    %c0_1 = arith.constant 0 : index
    %0 = vector.load %arg1[%c0, %c0_0, %c0_1] : memref<4x8x128xf32, #tpu.memory_space<vmem>>, vector<1x8x128xf32>
    %1 = vector.shape_cast %0 : vector<1x8x128xf32> to vector<8x128xf32>
    %c1 = arith.constant 1 : index
    %c0_2 = arith.constant 0 : index
    %c0_3 = arith.constant 0 : index
    %2 = vector.load %arg1[%c1, %c0_2, %c0_3] : memref<4x8x128xf32, #tpu.memory_space<vmem>>, vector<1x8x128xf32>
    %3 = vector.shape_cast %2 : vector<1x8x128xf32> to vector<8x128xf32>
    %c2 = arith.constant 2 : index
    %c0_4 = arith.constant 0 : index
    %c0_5 = arith.constant 0 : index
    %4 = vector.load %arg1[%c2, %c0_4, %c0_5] : memref<4x8x128xf32, #tpu.memory_space<vmem>>, vector<1x8x128xf32>
    %5 = vector.shape_cast %4 : vector<1x8x128xf32> to vector<8x128xf32>
    %c3 = arith.constant 3 : index
    %c0_6 = arith.constant 0 : index
    %c0_7 = arith.constant 0 : index
    %6 = vector.load %arg1[%c3, %c0_6, %c0_7] : memref<4x8x128xf32, #tpu.memory_space<vmem>>, vector<1x8x128xf32>
    %7 = vector.shape_cast %6 : vector<1x8x128xf32> to vector<8x128xf32>
    %8 = arith.mulf %3, %3 : vector<8x128xf32>
    %9 = arith.mulf %5, %5 : vector<8x128xf32>
    %10 = arith.addf %8, %9 : vector<8x128xf32>
    %cst = arith.constant 0.000000e+00 : f32
    %11 = vector.broadcast %cst : f32 to vector<8x128xf32>
    %12 = arith.cmpf ogt, %10, %11 : vector<8x128xf32>
    %cst_8 = arith.constant 1.000000e+00 : f32
    %13 = vector.broadcast %cst_8 : f32 to vector<8x128xf32>
    %14 = arith.select %12, %10, %13 : vector<8x128xi1>, vector<8x128xf32>
    %15 = math.rsqrt %14 : vector<8x128xf32>
    %16 = math.sqrt %10 : vector<8x128xf32>
    %17 = arith.mulf %3, %15 : vector<8x128xf32>
    %cst_9 = arith.constant 1.000000e+00 : f32
    %18 = vector.broadcast %cst_9 : f32 to vector<8x128xf32>
    %19 = arith.select %12, %17, %18 : vector<8x128xi1>, vector<8x128xf32>
    %20 = arith.mulf %5, %15 : vector<8x128xf32>
    %cst_10 = arith.constant 0.000000e+00 : f32
    %21 = vector.broadcast %cst_10 : f32 to vector<8x128xf32>
    %22 = arith.select %12, %20, %21 : vector<8x128xi1>, vector<8x128xf32>
    %cst_11 = arith.constant 1.000000e+00 : f32
    %23 = vector.broadcast %cst_11 : f32 to vector<8x128xf32>
    %24 = arith.subf %16, %23 : vector<8x128xf32>
    %cst_12 = arith.constant 0.00729382038 : f32
    %25 = vector.broadcast %cst_12 : f32 to vector<8x128xf32>
    %26 = arith.mulf %25, %1 : vector<8x128xf32>
    %27 = math.cos %26 : vector<8x128xf32>
    %cst_13 = arith.constant 0.00729382038 : f32
    %28 = vector.broadcast %cst_13 : f32 to vector<8x128xf32>
    %29 = arith.mulf %28, %1 : vector<8x128xf32>
    %30 = math.sin %29 : vector<8x128xf32>
    %31 = arith.mulf %27, %24 : vector<8x128xf32>
    %32 = arith.mulf %30, %7 : vector<8x128xf32>
    %33 = arith.addf %31, %32 : vector<8x128xf32>
    %cst_14 = arith.constant 0.000000e+00 : f32
    %34 = vector.broadcast %cst_14 : f32 to vector<8x128xf32>
    %35 = arith.subf %34, %30 : vector<8x128xf32>
    %36 = arith.mulf %35, %24 : vector<8x128xf32>
    %37 = arith.mulf %27, %7 : vector<8x128xf32>
    %38 = arith.addf %36, %37 : vector<8x128xf32>
    %cst_15 = arith.constant 0.842314124 : f32
    %39 = vector.broadcast %cst_15 : f32 to vector<8x128xf32>
    %40 = arith.mulf %39, %1 : vector<8x128xf32>
    %41 = math.exp %40 : vector<8x128xf32>
    %42 = arith.mulf %41, %33 : vector<8x128xf32>
    %43 = arith.mulf %41, %38 : vector<8x128xf32>
    %cst_16 = arith.constant 1.000000e+00 : f32
    %44 = vector.broadcast %cst_16 : f32 to vector<8x128xf32>
    %45 = arith.addf %42, %44 : vector<8x128xf32>
    %cst_17 = arith.constant 1.000000e+00 : f32
    %46 = vector.broadcast %cst_17 : f32 to vector<8x128xf32>
    %47 = arith.mulf %1, %46 : vector<8x128xf32>
    %48 = math.cos %47 : vector<8x128xf32>
    %49 = math.sin %47 : vector<8x128xf32>
    %50 = arith.mulf %19, %48 : vector<8x128xf32>
    %51 = arith.mulf %22, %49 : vector<8x128xf32>
    %52 = arith.subf %50, %51 : vector<8x128xf32>
    %53 = arith.mulf %22, %48 : vector<8x128xf32>
    %54 = arith.mulf %19, %49 : vector<8x128xf32>
    %55 = arith.addf %53, %54 : vector<8x128xf32>
    %56 = arith.mulf %52, %45 : vector<8x128xf32>
    %57 = arith.mulf %55, %45 : vector<8x128xf32>
    %c0_18 = arith.constant 0 : index
    %c0_19 = arith.constant 0 : index
    %c0_20 = arith.constant 0 : index
    %58 = vector.load %arg2[%c0_18, %c0_19, %c0_20] : memref<3x8x128xf32, #tpu.memory_space<vmem>>, vector<1x8x128xf32>
    %59 = vector.shape_cast %58 : vector<1x8x128xf32> to vector<8x128xf32>
    %60 = vector.shape_cast %56 : vector<8x128xf32> to vector<1x8x128xf32>
    tpu.vector_store %arg2[%c0_18, %c0_19, %c0_20], %60 {strides = array<i32>} : memref<3x8x128xf32, #tpu.memory_space<vmem>>, vector<1x8x128xf32>,
    %c1_21 = arith.constant 1 : index
    %c0_22 = arith.constant 0 : index
    %c0_23 = arith.constant 0 : index
    %61 = vector.load %arg2[%c1_21, %c0_22, %c0_23] : memref<3x8x128xf32, #tpu.memory_space<vmem>>, vector<1x8x128xf32>
    %62 = vector.shape_cast %61 : vector<1x8x128xf32> to vector<8x128xf32>
    %63 = vector.shape_cast %57 : vector<8x128xf32> to vector<1x8x128xf32>
    tpu.vector_store %arg2[%c1_21, %c0_22, %c0_23], %63 {strides = array<i32>} : memref<3x8x128xf32, #tpu.memory_space<vmem>>, vector<1x8x128xf32>,
    %c2_24 = arith.constant 2 : index
    %c0_25 = arith.constant 0 : index
    %c0_26 = arith.constant 0 : index
    %64 = vector.load %arg2[%c2_24, %c0_25, %c0_26] : memref<3x8x128xf32, #tpu.memory_space<vmem>>, vector<1x8x128xf32>
    %65 = vector.shape_cast %64 : vector<1x8x128xf32> to vector<8x128xf32>
    %66 = vector.shape_cast %43 : vector<8x128xf32> to vector<1x8x128xf32>
    tpu.vector_store %arg2[%c2_24, %c0_25, %c0_26], %66 {strides = array<i32>} : memref<3x8x128xf32, #tpu.memory_space<vmem>>, vector<1x8x128xf32>,
    return
  }
  func.func @transform_0(%arg0: i32) -> (i32, i32, i32) {
    %c0_i32 = arith.constant 0 : i32
    %c0_i32_0 = arith.constant 0 : i32
    %c0_i32_1 = arith.constant 0 : i32
    return %c0_i32, %arg0, %c0_i32_0 : i32, i32, i32
  }
  func.func @transform_1(%arg0: i32) -> (i32, i32, i32) {
    %c0_i32 = arith.constant 0 : i32
    %c0_i32_0 = arith.constant 0 : i32
    %c0_i32_1 = arith.constant 0 : i32
    return %c0_i32, %arg0, %c0_i32_0 : i32, i32, i32
  }
}

</mosaic_0001>

<bundles_post_ra>
// kernel: tpu_custom_call.1
= control target key start
LH: loop header
LB: loop body
LE: loop exit
PB: predicated region body
PF: predicated region fallthrough
CT: control target
= control target key end

     0   :  { %6 = vsyncpa [#allocation3], 0  ;;  %s773_s0 = inlined_call_operand.hbm [shape: f32[4,8,128], index: 0, kind: input, shape index: {}]   ;;  %s774_s1 = inlined_call_operand.hbm [shape: f32[3,8,128], index: 1, kind: output, shape index: {}]  }
   0x1   :  { %7 = vsyncpa [#allocation4], 0  ;;  %s603_s6 = smov [#allocation2]   ;;  %s555_s10 = scalar_lea.hbm %s773_s0, 512 }
   0x2   :  { %s13_s7 = sshll.u32 %s603_s6, 4  ;;  %p556_p0 = scmp.ne.s32.totalorder %s773_s0, %s555_s10  ;;  %s14_s7 = int_to_ptr.vmem [resolvable:$true] %s13_s7 }
   0x3   :  { %p559_p1 = scmp.lt.u32.totalorder %s555_s10, %s773_s0 }
   0x5   :  { %p561_p2 = pnand %p559_p1, %p556_p0 }
   0x7   :  { %564 = shalt.err (!%p561_p2)
}
   0x8   :  { %s565_s15 = scalar_lea.vmem %s14_s7, 512  ;;  %p570_p4 = scmp.lt.s32.totalorder %s14_s7, %s14_s7 }
   0x9   :  { %p566_p3 = scmp.ne.s32.totalorder %s14_s7, %s565_s15  ;;  %p571_p5 = scmp.lt.s32.totalorder %s565_s15, %s565_s15 }
   0xb   :  { %p572_p6 = por %p571_p5, %p570_p4 }
   0xd   :  { %p573_p7 = pnand %p572_p6, %p566_p3 }
   0xf   :  { %576 = shalt.err (!%p573_p7)
}
  0x10   :  { %s604_s16 = smov 128   ;;  %s605_s17 = smov 8  }
  0x11   :  { %19 = dma.hbm_to_vmem [thread:$0]  %s773_s0, 512, %s14_s7, [#allocation3], %s604_s16, %s604_s16, %s605_s17  }
  0x12   :  { %599 = dma.done.wait [#allocation3], 512  }
  0x13   :  { %600 = vsyncadd [#allocation3], 4294966784  ;;  %v638_v0 = vld [vmem:[#allocation2] sm:$0xff]  ;;  %v606_v22 = vmov 683565275   ;;  %s612_s0 = smov [#allocation5]  }
  0x14   :  { %v641_v1 = vmul.f32 0.0072938204, %v638_v0  ;;  %v272_v2 = vand.u32 2139095040, %v638_v0  ;;  %v269_v9 = vand.u32 2147483647, %v638_v0  ;;  %s494_s20 = sshll.u32 %s612_s0, 4  ;;  %s495_s20 = int_to_ptr.vmem [resolvable:$true] %s494_s20 }
  0x15   :  { %v607_v24 = vmov 2475754826   ;;  %v608_v26 = vmov 2131351028   ;;  %v609_v29 = vmov 2102212464   ;;  %p582_p9 = scmp.lt.s32.totalorder %s495_s20, %s495_s20 }
  0x16   :  { %v52_v3 = vand.u32 2139095040, %v641_v1  ;;  %v273_v4 = vshrl.u32 %v272_v2, 23  ;;  %v49_v5 = vand.u32 2147483647, %v641_v1  ;;  %v651_v13 = vand.u32 8388607, %v269_v9 }
  0x17   :  { %v610_v31 = vmov 920167782   ;;  %v611_v45 = vmov 1326507024   ;;  %vm51_vm14 = vcmp.lt.s32.totalorder %v641_v1, 0  ;;  %s577_s21 = scalar_lea.vmem %s495_s20, 384 }
  0x18   :  { %v53_v6 = vshrl.u32 %v52_v3, 23  ;;  %v515_v7 = vadd.s32 4294967169, %v273_v4  ;;  %v56_v10 = vand.u32 8388607, %v49_v5  ;;  %v277_v21 = vor.u32 8388608, %v651_v13  ;;  %p578_p8 = scmp.ne.s32.totalorder %s495_s20, %s577_s21  ;;  %p583_p10 = scmp.lt.s32.totalorder %s577_s21, %s577_s21 }
  0x19   :  { %vm50_vm15 = vcmp.le.f32.partialorder %v49_v5, 0.7853982 }
  0x1a   :  { %v507_v8 = vadd.s32 4294967169, %v53_v6  ;;  %v279_v11 = vadd.s32 1, %v515_v7  ;;  %v57_v15 = vor.u32 8388608, %v56_v10  ;;  %p584_p11 = por %p583_p10, %p582_p9 }
  0x1c   :  { %v59_v12 = vadd.s32 1, %v507_v8  ;;  %vm280_vm0 = vcmp.gt.s32.totalorder %v279_v11, 0  ;;  %v654_v28 = vshll.u32 %v57_v15, 8  ;;  %p585_p12 = pnand %p584_p11, %p578_p8 }
  0x1d   :  { %v281_v14 = vsel %vm280_vm0, %v279_v11, 0 }
  0x1e   :  { %vm60_vm1 = vcmp.gt.s32.totalorder %v59_v12, 0  ;;  %v283_v18 = vand.u32 31, %v281_v14  ;;  %v656_v33 = vshrl.u32 %v281_v14, 5 }
  0x1f   :  { %v61_v16 = vsel %vm60_vm1, %v59_v12, 0 }
  0x20   :  { %v63_v17 = vand.u32 31, %v61_v16  ;;  %v62_v19 = vshrl.u32 %v61_v16, 5  ;;  %v284_v34 = vsub.s32 32, %v283_v18  ;;  %v286_v40 = vshll.u32 %v606_v22, %v283_v18 }
  0x21   :  { %v289_v41 = vshll.u32 %v607_v24, %v283_v18  ;;  %v292_v55 = vshll.u32 %v608_v26, %v283_v18  ;;  %v295_v12 = vshll.u32 %v609_v29, %v283_v18  ;;  %v298_v15 = vshll.u32 %v610_v31, %v283_v18 }
  0x22   :  { %v64_v20 = vsub.s32 32, %v63_v17  ;;  %v66_v23 = vshll.u32 %v606_v22, %v63_v17  ;;  %v69_v25 = vshll.u32 %v607_v24, %v63_v17  ;;  %v72_v27 = vshll.u32 %v608_v26, %v63_v17 }
  0x23   :  { %v75_v30 = vshll.u32 %v609_v29, %v63_v17  ;;  %v78_v32 = vshll.u32 %v610_v31, %v63_v17  ;;  %vm81_vm2 = vcmp.lt.s32.totalorder %v62_v19, 1  ;;  %vm82_vm3 = vcmp.lt.s32.totalorder %v62_v19, 2 }
  0x24   :  { %v65_v35 = vshrl.u32 %v606_v22, %v64_v20  ;;  %v67_v36 = vshrl.u32 %v607_v24, %v64_v20  ;;  %v70_v37 = vshrl.u32 %v608_v26, %v64_v20  ;;  %v73_v38 = vshrl.u32 %v609_v29, %v64_v20 }
  0x25   :  { %v76_v39 = vshrl.u32 %v610_v31, %v64_v20  ;;  %v79_v46 = vshrl.u32 %v611_v45, %v64_v20  ;;  %vm83_vm4 = vcmp.lt.s32.totalorder %v62_v19, 3  ;;  %vm84_vm5 = vcmp.lt.s32.totalorder %v62_v19, 4 }
  0x26   :  { %v68_v42 = vor.u32 %v67_v36, %v66_v23  ;;  %v71_v43 = vor.u32 %v70_v37, %v69_v25  ;;  %v74_v44 = vor.u32 %v73_v38, %v72_v27  ;;  %v285_v58 = vshrl.u32 %v606_v22, %v284_v34 }
  0x27   :  { %v77_v47 = vor.u32 %v76_v39, %v75_v30  ;;  %v80_v48 = vor.u32 %v79_v46, %v78_v32  ;;  %v287_v59 = vshrl.u32 %v607_v24, %v284_v34  ;;  %v290_v63 = vshrl.u32 %v608_v26, %v284_v34 }
  0x28   :  { %v85_v49 = vsel %vm81_vm2, %v65_v35, %v68_v42  ;;  %v86_v50 = vsel %vm84_vm5, %v74_v44, 2102212464  ;;  %v89_v51 = vsel %vm81_vm2, %v68_v42, %v71_v43  ;;  %v93_v54 = vsel %vm81_vm2, %v71_v43, %v74_v44 }
  0x29   :  { %v87_v52 = vsel %vm83_vm4, %v71_v43, %v86_v50  ;;  %v90_v53 = vsel %vm84_vm5, %v77_v47, 920167782  ;;  %v94_v57 = vsel %vm84_vm5, %v80_v48, 1326507024  ;;  %v288_v6 = vor.u32 %v287_v59, %v286_v40 }
  0x2a   :  { %v91_v56 = vsel %vm83_vm4, %v74_v44, %v90_v53  ;;  %v88_v60 = vsel %vm82_vm3, %v85_v49, %v87_v52  ;;  %v95_v62 = vsel %vm83_vm4, %v77_v47, %v94_v57  ;;  %v291_v10 = vor.u32 %v290_v63, %v289_v41  ;;  %v712_v52 = vld [vmem:[#allocation2 + $0x8] sm:$0xff] }
  0x2b   :  { %v92_v61 = vsel %vm82_vm3, %v89_v51, %v91_v56  ;;  %v96_v2 = vsel %vm82_vm3, %v93_v54, %v95_v62  ;;  %v293_v11 = vshrl.u32 %v609_v29, %v284_v34  ;;  %v296_v14 = vshrl.u32 %v610_v31, %v284_v34 }
  0x2c   :  { %v668_v3 = vmul.u32.u64.low %v654_v28, %v92_v61  ;;  %v669_v4 = vmul.u32.u64.high %v654_v28, %v92_v61, %v668_v3  ;;  %v672_v7 = vmul.u32.u64.low %v654_v28, %v96_v2  ;;  %v673_v8 = vmul.u32.u64.high %v654_v28, %v96_v2, %v672_v7 }
  0x2d   :  { %v299_v16 = vshrl.u32 %v611_v45, %v284_v34  ;;  %v104_v17 = vmul.u32 %v654_v28, %v88_v60  ;;  %v294_v20 = vor.u32 %v293_v11, %v292_v55  ;;  %vm301_vm6 = vcmp.lt.s32.totalorder %v656_v33, 1 }
  0x2e   :  { %vm303_vm7 = vcmp.lt.s32.totalorder %v656_v33, 3  ;;  %v107_v19 = vadd.s32 1, %v669_v4  ;;  %v297_v22 = vor.u32 %v296_v14, %v295_v12  ;;  %vm304_vm8 = vcmp.lt.s32.totalorder %v656_v33, 4 }
  0x2f   :  { %v300_v23 = vor.u32 %v299_v16, %v298_v15  ;;  %vm106_vm9 = vc.u32 %v673_v8, %v668_v3  ;;  %vm302_vm10 = vcmp.lt.s32.totalorder %v656_v33, 2  ;;  %v306_v24 = vsel %vm304_vm8, %v294_v20, 2102212464  ;;  %v714_v33 = vld [vmem:[#allocation2 + $0x10] sm:$0xff] }
  0x30   :  { %v317_v18 = vshll.u32 %v277_v21, 8  ;;  %v108_v25 = vsel %vm106_vm9, %v107_v19, %v669_v4  ;;  %v305_v26 = vsel %vm301_vm6, %v285_v58, %v288_v6  ;;  %v309_v27 = vsel %vm301_vm6, %v288_v6, %v291_v10 }
  0x31   :  { %v310_v28 = vsel %vm304_vm8, %v297_v22, 920167782  ;;  %v109_v29 = vadd.s32 %v108_v25, %v104_v17  ;;  %v307_v30 = vsel %vm303_vm7, %v291_v10, %v306_v24  ;;  %v313_v13 = vsel %vm301_vm6, %v291_v10, %v294_v20 }
  0x32   :  { %v311_v31 = vsel %vm303_vm7, %v294_v20, %v310_v28  ;;  %v314_v32 = vsel %vm304_vm8, %v300_v23, 1326507024  ;;  %v308_v38 = vsel %vm302_vm10, %v305_v26, %v307_v30  ;;  %v30_v56 = vmul.f32 %v712_v52, %v712_v52 }
  0x33   :  { %v312_v21 = vsel %vm302_vm10, %v309_v27, %v311_v31  ;;  %v110_v34 = vadd.s32 536870912, %v109_v29  ;;  %v315_v35 = vsel %vm303_vm7, %v297_v22, %v314_v32  ;;  %v324_v44 = vmul.u32 %v317_v18, %v308_v38 }
  0x34   :  { %v699_v36 = vmul.u32.u64.low %v317_v18, %v312_v21  ;;  %v700_v37 = vmul.u32.u64.high %v317_v18, %v312_v21, %v699_v36  ;;  %v316_v39 = vsel %vm302_vm10, %v313_v13, %v315_v35  ;;  %v31_v57 = vmul.f32 %v714_v33, %v714_v33 }
  0x35   :  { %v111_v40 = vshrl.u32 %v110_v34, 30  ;;  %v706_v41 = vmul.u32.u64.low %v317_v18, %v316_v39  ;;  %v707_v42 = vmul.u32.u64.high %v317_v18, %v316_v39, %v706_v41  ;;  %v105_v59 = vadd.s32 %v668_v3, %v673_v8 }
  0x36   :  { %v327_v45 = vadd.s32 1, %v700_v37  ;;  %v724_v4 = vadd.f32 %v31_v57, %v30_v56  ;;  %v263_v35 = vmul.f32 0.8423141, %v638_v0  ;;  %vm271_vm2 = vcmp.lt.s32.totalorder %v638_v0, 0 }
  0x37   :  { %v112_v43 = vshll.u32 %v111_v40, 30  ;;  %vm326_vm11 = vc.u32 %v707_v42, %v699_v36  ;;  %v135_v20 = vsub.s32 4, %v111_v40  ;;  %v325_v19 = vadd.s32 %v699_v36, %v707_v42 }
  0x38   :  { %v328_v47 = vsel %vm326_vm11, %v327_v45, %v700_v37  ;;  %541 = vrsqrt.f32 %v724_v4  ;;  %vm33_vm0 = vcmp.gt.f32.partialorder %v724_v4, 0.0  ;;  %vm38_vm1 = vcmp.eq.f32.partialorder %v724_v4, inf }
  0x39   :  { %v113_v46 = vsub.s32 %v109_v29, %v112_v43  ;;  %v329_v49 = vadd.s32 %v328_v47, %v324_v44  ;;  %v136_v27 = vsel %vm51_vm14, %v135_v20, %v111_v40  ;;  %v34_v41 = vsel %vm33_vm0, %v724_v4, 1.0 }
  0x3a   :  { %v138_v21 = vsel %vm50_vm15, 0, %v136_v27  ;;  %vm40_vm3 = vcmp.eq.f32.partialorder %v724_v4, 0.0  ;;  %v41_v42 = vand.u32 2147483648, %v724_v4  ;;  %v264_v43 = vmul.f32 1.442695, %v263_v35 }
  0x3b   :  { %v115_v48 = vsub.s32 0, %v113_v46  ;;  %v330_v51 = vadd.s32 536870912, %v329_v49  ;;  %v245_v38 = vadd.s32 3, %v138_v21  ;;  %vm270_vm4 = vcmp.le.f32.partialorder %v269_v9, 0.7853982 }
  0x3c   :  { %vm141_vm11 = vweird.f32 %v641_v1 }
  0x3d   :  { %v508_v50 = vmin.u32 %v115_v48, %v113_v46  ;;  %v716_v54 = vshrl.u32 %v330_v51, 30  ;;  %v246_v47 = vand.u32 3, %v245_v38 }
  0x3f   :  { %v117_v53 = vclz %v508_v50  ;;  %v332_v58 = vshll.u32 %v716_v54, 30  ;;  %v355_v39 = vsub.s32 4, %v716_v54  ;;  %vm251_vm7 = vcmp.eq.s32.totalorder %v246_v47, 2 }
  0x40   :  { %vm248_vm9 = vcmp.eq.s32.totalorder %v246_v47, 0  ;;  %vm247_vm10 = vcmp.lt.s32.totalorder %v246_v47, 2 }
  0x41   :  { %v509_v55 = vadd.s32 4294967294, %v117_v53  ;;  %v333_v61 = vsub.s32 %v329_v49, %v332_v58  ;;  %v356_v48 = vsel %vm271_vm2, %v355_v39, %v716_v54 }
  0x42   :  { %v542_v31 = vpop.eup %541  ;;  %v358_v53 = vsel %vm270_vm4, 0, %v356_v48 }
  0x43   :  { %vm510_vm12 = vcmp.lt.s32.totalorder %v509_v55, 0  ;;  %v335_v6 = vsub.s32 0, %v333_v61  ;;  %v37_v5 = vmul.f32 %v542_v31, %v724_v4  ;;  %v465_v9 = vadd.s32 3, %v358_v53 }
  0x44   :  { %v120_v60 = vsel %vm510_vm12, 0, %v509_v55 }
  0x45   :  { %v121_v62 = vsub.s32 32, %v120_v60  ;;  %v122_v63 = vshll.u32 %v113_v46, %v120_v60  ;;  %v125_v2 = vsub.s32 4294967266, %v120_v60  ;;  %v516_v11 = vmin.u32 %v335_v6, %v333_v61 }
  0x46   :  { %v39_v45 = vsel %vm38_vm1, %v724_v4, %v37_v5  ;;  %v142_v46 = vand.u32 3, %v138_v21 }
  0x47   :  { %v123_v7 = vshrl.u32 %v105_v59, %v121_v62  ;;  %v126_v10 = vadd.s32 127, %v125_v2  ;;  %v337_v15 = vclz %v516_v11  ;;  %v42_v50 = vsel %vm40_vm3, %v41_v42, %v39_v45  ;;  %v29_v62 = vld [vmem:[#allocation2 + $0x18] sm:$0xff] }
  0x48   :  { %vm143_vm5 = vcmp.lt.s32.totalorder %v142_v46, 2  ;;  %vm147_vm6 = vcmp.eq.s32.totalorder %v142_v46, 2  ;;  %vm144_vm8 = vcmp.eq.s32.totalorder %v142_v46, 0  ;;  %v506_v59 = vadd.f32 -1.0, %v42_v50 }
  0x49   :  { %v124_v12 = vor.u32 %v123_v7, %v122_v63  ;;  %v127_v14 = vshll.u32 %v126_v10, 23  ;;  %v517_v3 = vadd.s32 4294967294, %v337_v15  ;;  %vm361_vm3 = vweird.f32 %v638_v0 }
  0x4b   :  { %v128_v16 = vor.u32 4788187, %v127_v14  ;;  %v131_v17 = vcvt.s32.f32 %v124_v12  ;;  %vm518_vm13 = vcmp.lt.s32.totalorder %v517_v3, 0  ;;  %v362_v12 = vand.u32 3, %v358_v53 }
  0x4c   :  { %v340_v23 = vsel %vm518_vm13, 0, %v517_v3  ;;  %v466_v14 = vand.u32 3, %v465_v9 }
  0x4d   :  { %v129_v8 = vand.u32 2147483647, %v128_v16  ;;  %v341_v24 = vsub.s32 32, %v340_v23  ;;  %v342_v18 = vshll.u32 %v333_v61, %v340_v23  ;;  %v345_v25 = vsub.s32 4294967266, %v340_v23 }
  0x4e   :  { %vm367_vm12 = vcmp.eq.s32.totalorder %v362_v12, 2  ;;  %vm471_vm13 = vcmp.eq.s32.totalorder %v466_v14, 2  ;;  %vm468_vm1 = vcmp.eq.s32.totalorder %v466_v14, 0 }
  0x4f   :  { %v132_v22 = vmul.f32 %v131_v17, %v129_v8  ;;  %v343_v28 = vshrl.u32 %v325_v19, %v341_v24  ;;  %v346_v29 = vadd.s32 127, %v345_v25 }
  0x51   :  { %v133_v26 = vxor.u32 2147483648, %v132_v22  ;;  %v344_v32 = vor.u32 %v343_v28, %v342_v18  ;;  %v347_v34 = vshll.u32 %v346_v29, 23 }
  0x53   :  { %v134_v30 = vsel %vm51_vm14, %v133_v26, %v132_v22  ;;  %v348_v36 = vor.u32 4788187, %v347_v34  ;;  %v351_v37 = vcvt.s32.f32 %v344_v32  ;;  %vm363_vm14 = vcmp.lt.s32.totalorder %v362_v12, 2 }
  0x54   :  { %v137_v13 = vsel %vm50_vm15, %v641_v1, %v134_v30  ;;  %vm364_vm15 = vcmp.eq.s32.totalorder %v362_v12, 0 }
  0x55   :  { %543 = vcosq.f32 %v137_v13  ;;  %v349_v40 = vand.u32 2147483647, %v348_v36 }
  0x56   :  { %545 = vsinq.f32 %v137_v13 }
  0x57   :  { %v352_v44 = vmul.f32 %v351_v37, %v349_v40  ;;  %547 = vrsqrt.f32 %v34_v41 }
  0x58   :  { %549 = vpow2.f32 %v264_v43 }
  0x59   :  { %v353_v49 = vxor.u32 2147483648, %v352_v44 }
  0x5b   :  { %v354_v51 = vsel %vm271_vm2, %v353_v49, %v352_v44  ;;  %vm467_vm2 = vcmp.lt.s32.totalorder %v466_v14, 2 }
  0x5c   :  { %v357_v56 = vsel %vm270_vm4, %v638_v0, %v354_v51 }
  0x5d   :  { %551 = vcosq.f32 %v357_v56 }
  0x5e   :  { %553 = vsinq.f32 %v357_v56 }
  0x5f   :  { %v544_v55 = vpop.eup %543 }
  0x60   :  { %v546_v57 = vpop.eup %545  ;;  %v148_v58 = vxor.u32 2147483648, %v544_v55 }
  0x61   :  { %v145_v54 = vxor.u32 2147483648, %v546_v57  ;;  %v548_v15 = vpop.eup %547 }
  0x62   :  { %v149_v60 = vsel %vm147_vm6, %v148_v58, %v546_v57  ;;  %v253_v61 = vsel %vm251_vm7, %v148_v58, %v546_v57  ;;  %v550_v20 = vpop.eup %549  ;;  %v43_v22 = vmul.f32 %v548_v15, %v712_v52  ;;  %v45_v24 = vmul.f32 %v548_v15, %v714_v33 }
  0x63   :  { %v146_v63 = vsel %vm144_vm8, %v544_v55, %v145_v54  ;;  %v250_v2 = vsel %vm248_vm9, %v544_v55, %v145_v54 }
  0x64   :  { %v150_v6 = vsel %vm143_vm5, %v146_v63, %v149_v60  ;;  %v254_v7 = vsel %vm247_vm10, %v250_v2, %v253_v61  ;;  %v44_v52 = vsel %vm33_vm0, %v43_v22, 1.0  ;;  %v46_v33 = vsel %vm33_vm0, %v45_v24, 0.0 }
  0x65   :  { %v151_v10 = vsel %vm141_vm11, nan, %v150_v6  ;;  %v255_v11 = vsel %vm141_vm11, nan, %v254_v7 }
  0x66   :  { %v256_v16 = vmul.f32 %v506_v59, %v151_v10  ;;  %v257_v17 = vmul.f32 %v255_v11, %v29_v62  ;;  %v259_v3 = vsub.f32 0.0, %v255_v11  ;;  %v261_v8 = vmul.f32 %v151_v10, %v29_v62 }
  0x67   :  { %v552_v23 = vpop.eup %551 }
  0x68   :  { %v258_v19 = vadd.f32 %v257_v17, %v256_v16  ;;  %v260_v1 = vmul.f32 %v506_v59, %v259_v3  ;;  %v554_v25 = vpop.eup %553  ;;  %v368_v26 = vxor.u32 2147483648, %v552_v23 }
  0x69   :  { %v365_v28 = vxor.u32 2147483648, %v554_v25 }
  0x6a   :  { %v262_v18 = vadd.f32 %v261_v8, %v260_v1  ;;  %v266_v27 = vmul.f32 %v550_v20, %v258_v19  ;;  %v369_v30 = vsel %vm367_vm12, %v368_v26, %v554_v25  ;;  %v473_v31 = vsel %vm471_vm13, %v368_v26, %v554_v25 }
  0x6b   :  { %v366_v13 = vsel %vm364_vm15, %v552_v23, %v365_v28  ;;  %v470_v21 = vsel %vm468_vm1, %v552_v23, %v365_v28 }
  0x6c   :  { %v267_v29 = vmul.f32 %v550_v20, %v262_v18  ;;  %v370_v32 = vsel %vm363_vm14, %v366_v13, %v369_v30  ;;  %v474_v34 = vsel %vm467_vm2, %v470_v21, %v473_v31  ;;  %v268_v35 = vadd.f32 1.0, %v266_v27 }
  0x6d   :  { %v371_v36 = vsel %vm361_vm3, nan, %v370_v32  ;;  %v475_v37 = vsel %vm361_vm3, nan, %v474_v34 }
  0x6e   :  { %488 = vst [vmem:[#allocation5 + $0x10] sm:$0xff] %v267_v29  ;;  %v476_v5 = vmul.f32 %v371_v36, %v44_v52  ;;  %v477_v38 = vmul.f32 %v475_v37, %v46_v33  ;;  %v479_v0 = vmul.f32 %v371_v36, %v46_v33  ;;  %v480_v39 = vmul.f32 %v475_v37, %v44_v52 }
  0x70   :  { %v478_v40 = vsub.f32 %v476_v5, %v477_v38  ;;  %v481_v41 = vadd.f32 %v480_v39, %v479_v0 }
  0x72   :  { %v482_v42 = vmul.f32 %v478_v40, %v268_v35  ;;  %v483_v4 = vmul.f32 %v481_v41, %v268_v35 }
  0x74   :  { %484 = vst [vmem:[#allocation5] sm:$0xff] %v482_v42  ;;  %486 = vst [vmem:[#allocation5 + $0x8] sm:$0xff] %v483_v4 }
  0x75   :  { %588 = shalt.err (!%p585_p12)
}
  0x76   :  { %s589_s24 = scalar_lea.hbm %s774_s1, 384 }
  0x77   :  { %p590_p13 = scmp.ne.s32.totalorder %s774_s1, %s589_s24  ;;  %p593_p0 = scmp.lt.u32.totalorder %s589_s24, %s774_s1 }
  0x79   :  { %p595_p1 = pnand %p593_p0, %p590_p13 }
  0x7b   :  { %598 = shalt.err (!%p595_p1)
}
  0x7c   :  { %500 = dma.vmem_to_hbm [thread:$0]  %s495_s20, 384, %s774_s1, [#allocation4], %s604_s16, %s604_s16, %s605_s17  }
  0x7d   :  { %601 = dma.done.wait [#allocation4], 384  }
  0x7e   :  { %602 = vsyncadd [#allocation4], 4294966912 }
  0x7f   :  { %504 = vsyncpa [#allocation3], 1 }
  0x80   :  { %505 = vsyncpa [#allocation4], 1 }

</bundles_post_ra>
